<compile_context>
chip_gen: v7x
topology: tpu7x:2x2x1
jax: 0.10.0
libtpu: 0.0.40
codegen_flags: <defaults>
</compile_context>

<pallas_src>
import functools

import jax
import jax.numpy as jnp
from jax.experimental import pallas as pl
from jax.experimental.pallas import tpu as pltpu


def _round_up(x, m):
    return (x + m - 1) // m * m


# ---------------------------------------------------------------------------
# Pallas kernel: fused  out = leaky_relu(X @ W + b)  with f32 accumulation.
# ---------------------------------------------------------------------------
def _gemm_bias_lrelu_kernel(x_ref, w_ref, b_ref, o_ref, acc_ref, *,
                            apply_act: bool, neg_slope: float):
    k = pl.program_id(2)

    @pl.when(k == 0)
    def _():
        acc_ref[...] = jnp.zeros_like(acc_ref)

    acc_ref[...] += jnp.dot(x_ref[...], w_ref[...],
                            preferred_element_type=jnp.float32)

    @pl.when(k == pl.num_programs(2) - 1)
    def _():
        out = acc_ref[...] + b_ref[...]          # (tm, tn) + (1, tn)
        if apply_act:
            out = jnp.where(out >= 0.0, out, neg_slope * out)
        o_ref[...] = out.astype(o_ref.dtype)


def _fused_gemm(x, w, b, *, apply_act, neg_slope=0.01):
    """out[:M, :N] = leaky_relu(x @ w + b).  x: (M, K), w: (K, N), b: (N,)."""
    M, K = x.shape
    _, N = w.shape

    # Tile sizes: sublane-aligned M, lane-dense K/N.
    tm = min(_round_up(M, 8), 128)
    tk = min(_round_up(K, 128), 512)
    tn = min(_round_up(N, 128), 128)
    Mp, Kp, Np = _round_up(M, tm), _round_up(K, tk), _round_up(N, tn)

    xp = jnp.pad(x.astype(jnp.float32), ((0, Mp - M), (0, Kp - K)))
    wp = jnp.pad(w.astype(jnp.float32), ((0, Kp - K), (0, Np - N)))
    bp = jnp.pad(b.astype(jnp.float32), (0, Np - N)).reshape(1, Np)

    kernel = functools.partial(_gemm_bias_lrelu_kernel,
                               apply_act=apply_act, neg_slope=neg_slope)

    out = pl.pallas_call(
        kernel,
        out_shape=jax.ShapeDtypeStruct((Mp, Np), jnp.float32),
        grid_spec=pltpu.PrefetchScalarGridSpec(
            num_scalar_prefetch=0,
            grid=(Mp // tm, Np // tn, Kp // tk),
            in_specs=[
                pl.BlockSpec((tm, tk), lambda i, j, k: (i, k)),
                pl.BlockSpec((tk, tn), lambda i, j, k: (k, j)),
                pl.BlockSpec((1, tn), lambda i, j, k: (0, j)),
            ],
            out_specs=pl.BlockSpec((tm, tn), lambda i, j, k: (i, j)),
            scratch_shapes=[pltpu.VMEM((tm, tn), jnp.float32)],
        ),
        compiler_params=pltpu.CompilerParams(
            dimension_semantics=("parallel", "parallel", "arbitrary"),
        ),
        cost_estimate=pl.CostEstimate(
            flops=2 * Mp * Np * Kp,
            transcendentals=0,
            bytes_accessed=4 * (Mp * Kp + Kp * Np + Mp * Np),
        ),
    )(xp, wp, bp)
    return out[:M, :N]


# ---------------------------------------------------------------------------
# Conv2d = im2col (layout only, in the wrapper) + fused Pallas GEMM.
# ---------------------------------------------------------------------------
def conv2d_pallas(x, w, b=None, *, stride=1, padding=0,
                  apply_act=False, neg_slope=0.01):
    B, Cin, H, W = x.shape
    Cout, Cin2, kh, kw = w.shape
    assert Cin == Cin2
    Ho = (H + 2 * padding - kh) // stride + 1
    Wo = (W + 2 * padding - kw) // stride + 1

    xp = jnp.pad(x, ((0, 0), (0, 0), (padding, padding), (padding, padding)))

    # im2col: one strided slice per kernel tap (pure indexing, no compute).
    taps = []
    for ky in range(kh):
        for kx in range(kw):
            taps.append(xp[:, :, ky:ky + stride * Ho:stride,
                               kx:kx + stride * Wo:stride])
    patches = jnp.stack(taps, axis=0)                   # (kh*kw, B, Cin, Ho, Wo)
    patches = patches.transpose(1, 3, 4, 2, 0)          # (B, Ho, Wo, Cin, kh*kw)
    patches = patches.reshape(B * Ho * Wo, Cin * kh * kw)

    # PyTorch weight layout (Cout, Cin, kh, kw) -> (K, N) with K = (ci, ky, kx).
    wmat = w.reshape(Cout, Cin * kh * kw).T
    bias = b if b is not None else jnp.zeros((Cout,), jnp.float32)

    y = _fused_gemm(patches, wmat, bias,
                    apply_act=apply_act, neg_slope=neg_slope)
    return y.reshape(B, Ho, Wo, Cout).transpose(0, 3, 1, 2)


# ---------------------------------------------------------------------------
# Discriminator: parameters + forward (Pallas) + pure-JAX reference.
# ---------------------------------------------------------------------------
def init_params(key, image_size, conv_dim, c_dim, repeat_num):
    keys = jax.random.split(key, repeat_num + 2)
    main = []
    cin, cout = 3, conv_dim
    for i in range(repeat_num):
        kw_, kb_ = jax.random.split(keys[i])
        fan_in = cin * 4 * 4
        w = jax.random.normal(kw_, (cout, cin, 4, 4), jnp.float32) / jnp.sqrt(fan_in)
        b = 0.01 * jax.random.normal(kb_, (cout,), jnp.float32)
        main.append((w, b))
        cin, cout = cout, cout * 2
    curr_dim = cin
    ksize = image_size // (2 ** repeat_num)
    conv1_w = jax.random.normal(keys[repeat_num], (1, curr_dim, 3, 3),
                                jnp.float32) / jnp.sqrt(curr_dim * 9)
    conv2_w = jax.random.normal(keys[repeat_num + 1],
                                (c_dim, curr_dim, ksize, ksize),
                                jnp.float32) / jnp.sqrt(curr_dim * ksize * ksize)
    return {"main": main, "conv1_w": conv1_w, "conv2_w": conv2_w}


def discriminator_forward(params, x):
    h = x
    for (w, b) in params["main"]:
        h = conv2d_pallas(h, w, b, stride=2, padding=1, apply_act=True)
    out_src = conv2d_pallas(h, params["conv1_w"], None,
                            stride=1, padding=1, apply_act=False)
    out_cls = conv2d_pallas(h, params["conv2_w"], None,
                            stride=1, padding=0, apply_act=False)
    # conv2's kernel equals the remaining spatial extent -> spatial is 1x1.
    return out_src, out_cls.reshape(out_cls.shape[0], out_cls.shape[1])


def _conv_ref(x, w, b, stride, padding):
    y = jax.lax.conv_general_dilated(
        x, w, window_strides=(stride, stride),
        padding=[(padding, padding), (padding, padding)],
        dimension_numbers=("NCHW", "OIHW", "NCHW"),
        precision=jax.lax.Precision.HIGHEST)
    if b is not None:
        y = y + b.reshape(1, -1, 1, 1)
    return y


def discriminator_ref(params, x):
    h = x
    for (w, b) in params["main"]:
        h = _conv_ref(h, w, b, 2, 1)
        h = jnp.where(h >= 0, h, 0.01 * h)
    out_src = _conv_ref(h, params["conv1_w"], None, 1, 1)
    out_cls = _conv_ref(h, params["conv2_w"], None, 1, 0)
    return out_src, out_cls.reshape(out_cls.shape[0], out_cls.shape[1])


if __name__ == "__main__":
    # Small config consistent with the module structure:
    # image_size=16, conv_dim=8, c_dim=5, repeat_num=3, batch=2.
    IMAGE_SIZE, CONV_DIM, C_DIM, REPEAT_NUM, BATCH = 16, 8, 5, 3, 2

    key = jax.random.PRNGKey(0)
    k_param, k_x = jax.random.split(key)
    params = init_params(k_param, IMAGE_SIZE, CONV_DIM, C_DIM, REPEAT_NUM)
    x = jax.random.normal(k_x, (BATCH, 3, IMAGE_SIZE, IMAGE_SIZE), jnp.float32)

    out_src, out_cls = jax.block_until_ready(
        jax.jit(discriminator_forward)(params, x))
    ref_src, ref_cls = jax.block_until_ready(discriminator_ref(params, x))

    final_sp = IMAGE_SIZE // (2 ** REPEAT_NUM)
    assert out_src.shape == (BATCH, 1, final_sp, final_sp), out_src.shape
    assert out_cls.shape == (BATCH, C_DIM), out_cls.shape
    assert jnp.allclose(out_src, ref_src, rtol=1e-3, atol=1e-3), \
        float(jnp.max(jnp.abs(out_src - ref_src)))
    assert jnp.allclose(out_cls, ref_cls, rtol=1e-3, atol=1e-3), \
        float(jnp.max(jnp.abs(out_cls - ref_cls)))
    print("KERNEL_OK")
</pallas_src>

<mosaic_0001>
module attributes {stable_mosaic.version = 11 : i64} {
  func.func @_gemm_bias_lrelu_kernel(%arg0: i32, %arg1: i32, %arg2: i32, %arg3: memref<128x128xf32, #tpu.memory_space<vmem>>, %arg4: memref<128x128xf32, #tpu.memory_space<vmem>>, %arg5: memref<1x128xf32, #tpu.memory_space<vmem>>, %arg6: memref<128x128xf32, #tpu.memory_space<vmem>>, %arg7: memref<128x128xf32, #tpu.memory_space<vmem>>) attributes {dimension_semantics = [#tpu.dimension_semantics<parallel>, #tpu.dimension_semantics<parallel>, #tpu.dimension_semantics<arbitrary>], iteration_bounds = array<i64: 1, 1, 1>, scalar_prefetch = 0 : i64, scratch_operands = 1 : i64, tpu.core_type = #tpu.core_type<tc>, window_params = [{transform_indices = @transform_0, window_bounds = array<i64: 128, 128>}, {transform_indices = @transform_1, window_bounds = array<i64: 128, 128>}, {transform_indices = @transform_2, window_bounds = array<i64: 1, 128>}, {transform_indices = @transform_3, window_bounds = array<i64: 128, 128>}]} {
    %c0_i32 = arith.constant 0 : i32
    %0 = arith.cmpi eq, %arg2, %c0_i32 : i32
    %1 = arith.extui %0 : i1 to i32
    %c0_i32_0 = arith.constant 0 : i32
    %2 = arith.cmpi ne, %1, %c0_i32_0 : i32
    scf.if %2 {
      %cst_10 = arith.constant 0.000000e+00 : f32
      %12 = vector.broadcast %cst_10 : f32 to vector<128x128xf32>
      %c0_11 = arith.constant 0 : index
      %c0_12 = arith.constant 0 : index
      %13 = vector.load %arg7[%c0_11, %c0_12] : memref<128x128xf32, #tpu.memory_space<vmem>>, vector<128x128xf32>
      tpu.vector_store %arg7[%c0_11, %c0_12], %12 {strides = array<i32>} : memref<128x128xf32, #tpu.memory_space<vmem>>, vector<128x128xf32>,
    } else {
    }
    %c0 = arith.constant 0 : index
    %c0_1 = arith.constant 0 : index
    %3 = vector.load %arg7[%c0, %c0_1] : memref<128x128xf32, #tpu.memory_space<vmem>>, vector<128x128xf32>
    %c0_2 = arith.constant 0 : index
    %c0_3 = arith.constant 0 : index
    %4 = vector.load %arg3[%c0_2, %c0_3] : memref<128x128xf32, #tpu.memory_space<vmem>>, vector<128x128xf32>
    %c0_4 = arith.constant 0 : index
    %c0_5 = arith.constant 0 : index
    %5 = vector.load %arg4[%c0_4, %c0_5] : memref<128x128xf32, #tpu.memory_space<vmem>>, vector<128x128xf32>
    %cst = arith.constant dense<0.000000e+00> : vector<128x128xf32>
    %6 = tpu.matmul %4, %5, %cst {dimension_numbers = #tpu.dot_dimension_numbers<[1], [0], [0], [1], [0, 0, 1, 1], [], []>} : vector<128x128xf32>, vector<128x128xf32>, vector<128x128xf32> -> vector<128x128xf32>
    %7 = arith.addf %3, %6 : vector<128x128xf32>
    %c0_6 = arith.constant 0 : index
    %c0_7 = arith.constant 0 : index
    %8 = vector.load %arg7[%c0_6, %c0_7] : memref<128x128xf32, #tpu.memory_space<vmem>>, vector<128x128xf32>
    tpu.vector_store %arg7[%c0_6, %c0_7], %7 {strides = array<i32>} : memref<128x128xf32, #tpu.memory_space<vmem>>, vector<128x128xf32>,
    %c0_i32_8 = arith.constant 0 : i32
    %9 = arith.cmpi eq, %arg2, %c0_i32_8 : i32
    %10 = arith.extui %9 : i1 to i32
    %c0_i32_9 = arith.constant 0 : i32
    %11 = arith.cmpi ne, %10, %c0_i32_9 : i32
    scf.if %11 {
      %c0_10 = arith.constant 0 : index
      %c0_11 = arith.constant 0 : index
      %12 = vector.load %arg7[%c0_10, %c0_11] : memref<128x128xf32, #tpu.memory_space<vmem>>, vector<128x128xf32>
      %c0_12 = arith.constant 0 : index
      %c0_13 = arith.constant 0 : index
      %13 = vector.load %arg5[%c0_12, %c0_13] : memref<1x128xf32, #tpu.memory_space<vmem>>, vector<1x128xf32>
      %14 = vector.broadcast %13 : vector<1x128xf32> to vector<128x128xf32>
      %15 = arith.addf %12, %14 : vector<128x128xf32>
      %cst_14 = arith.constant 0.000000e+00 : f32
      %16 = vector.broadcast %cst_14 : f32 to vector<128x128xf32>
      %17 = arith.cmpf oge, %15, %16 : vector<128x128xf32>
      %cst_15 = arith.constant 0.00999999977 : f32
      %18 = vector.broadcast %cst_15 : f32 to vector<128x128xf32>
      %19 = arith.mulf %18, %15 : vector<128x128xf32>
      %20 = arith.select %17, %15, %19 : vector<128x128xi1>, vector<128x128xf32>
      %c0_16 = arith.constant 0 : index
      %c0_17 = arith.constant 0 : index
      %21 = vector.load %arg6[%c0_16, %c0_17] : memref<128x128xf32, #tpu.memory_space<vmem>>, vector<128x128xf32>
      tpu.vector_store %arg6[%c0_16, %c0_17], %20 {strides = array<i32>} : memref<128x128xf32, #tpu.memory_space<vmem>>, vector<128x128xf32>,
    } else {
    }
    return
  }
  func.func @transform_0(%arg0: i32, %arg1: i32, %arg2: i32) -> (i32, i32) {
    %c0_i32 = arith.constant 0 : i32
    return %arg0, %arg2 : i32, i32
  }
  func.func @transform_1(%arg0: i32, %arg1: i32, %arg2: i32) -> (i32, i32) {
    %c0_i32 = arith.constant 0 : i32
    return %arg2, %arg1 : i32, i32
  }
  func.func @transform_2(%arg0: i32, %arg1: i32, %arg2: i32) -> (i32, i32) {
    %c0_i32 = arith.constant 0 : i32
    %c0_i32_0 = arith.constant 0 : i32
    return %c0_i32, %arg1 : i32, i32
  }
  func.func @transform_3(%arg0: i32, %arg1: i32, %arg2: i32) -> (i32, i32) {
    %c0_i32 = arith.constant 0 : i32
    return %arg0, %arg1 : i32, i32
  }
}

module attributes {stable_mosaic.version = 11 : i64} {
  func.func @_gemm_bias_lrelu_kernel(%arg0: i32, %arg1: i32, %arg2: i32, %arg3: memref<32x128xf32, #tpu.memory_space<vmem>>, %arg4: memref<128x128xf32, #tpu.memory_space<vmem>>, %arg5: memref<1x128xf32, #tpu.memory_space<vmem>>, %arg6: memref<32x128xf32, #tpu.memory_space<vmem>>, %arg7: memref<32x128xf32, #tpu.memory_space<vmem>>) attributes {dimension_semantics = [#tpu.dimension_semantics<parallel>, #tpu.dimension_semantics<parallel>, #tpu.dimension_semantics<arbitrary>], iteration_bounds = array<i64: 1, 1, 1>, scalar_prefetch = 0 : i64, scratch_operands = 1 : i64, tpu.core_type = #tpu.core_type<tc>, window_params = [{transform_indices = @transform_0, window_bounds = array<i64: 32, 128>}, {transform_indices = @transform_1, window_bounds = array<i64: 128, 128>}, {transform_indices = @transform_2, window_bounds = array<i64: 1, 128>}, {transform_indices = @transform_3, window_bounds = array<i64: 32, 128>}]} {
    %c0_i32 = arith.constant 0 : i32
    %0 = arith.cmpi eq, %arg2, %c0_i32 : i32
    %1 = arith.extui %0 : i1 to i32
    %c0_i32_0 = arith.constant 0 : i32
    %2 = arith.cmpi ne, %1, %c0_i32_0 : i32
    scf.if %2 {
      %cst_10 = arith.constant 0.000000e+00 : f32
      %12 = vector.broadcast %cst_10 : f32 to vector<32x128xf32>
      %c0_11 = arith.constant 0 : index
      %c0_12 = arith.constant 0 : index
      %13 = vector.load %arg7[%c0_11, %c0_12] : memref<32x128xf32, #tpu.memory_space<vmem>>, vector<32x128xf32>
      tpu.vector_store %arg7[%c0_11, %c0_12], %12 {strides = array<i32>} : memref<32x128xf32, #tpu.memory_space<vmem>>, vector<32x128xf32>,
    } else {
    }
    %c0 = arith.constant 0 : index
    %c0_1 = arith.constant 0 : index
    %3 = vector.load %arg7[%c0, %c0_1] : memref<32x128xf32, #tpu.memory_space<vmem>>, vector<32x128xf32>
    %c0_2 = arith.constant 0 : index
    %c0_3 = arith.constant 0 : index
    %4 = vector.load %arg3[%c0_2, %c0_3] : memref<32x128xf32, #tpu.memory_space<vmem>>, vector<32x128xf32>
    %c0_4 = arith.constant 0 : index
    %c0_5 = arith.constant 0 : index
    %5 = vector.load %arg4[%c0_4, %c0_5] : memref<128x128xf32, #tpu.memory_space<vmem>>, vector<128x128xf32>
    %cst = arith.constant dense<0.000000e+00> : vector<32x128xf32>
    %6 = tpu.matmul %4, %5, %cst {dimension_numbers = #tpu.dot_dimension_numbers<[1], [0], [0], [1], [0, 0, 1, 1], [], []>} : vector<32x128xf32>, vector<128x128xf32>, vector<32x128xf32> -> vector<32x128xf32>
    %7 = arith.addf %3, %6 : vector<32x128xf32>
    %c0_6 = arith.constant 0 : index
    %c0_7 = arith.constant 0 : index
    %8 = vector.load %arg7[%c0_6, %c0_7] : memref<32x128xf32, #tpu.memory_space<vmem>>, vector<32x128xf32>
    tpu.vector_store %arg7[%c0_6, %c0_7], %7 {strides = array<i32>} : memref<32x128xf32, #tpu.memory_space<vmem>>, vector<32x128xf32>,
    %c0_i32_8 = arith.constant 0 : i32
    %9 = arith.cmpi eq, %arg2, %c0_i32_8 : i32
    %10 = arith.extui %9 : i1 to i32
    %c0_i32_9 = arith.constant 0 : i32
    %11 = arith.cmpi ne, %10, %c0_i32_9 : i32
    scf.if %11 {
      %c0_10 = arith.constant 0 : index
      %c0_11 = arith.constant 0 : index
      %12 = vector.load %arg7[%c0_10, %c0_11] : memref<32x128xf32, #tpu.memory_space<vmem>>, vector<32x128xf32>
      %c0_12 = arith.constant 0 : index
      %c0_13 = arith.constant 0 : index
      %13 = vector.load %arg5[%c0_12, %c0_13] : memref<1x128xf32, #tpu.memory_space<vmem>>, vector<1x128xf32>
      %14 = vector.broadcast %13 : vector<1x128xf32> to vector<32x128xf32>
      %15 = arith.addf %12, %14 : vector<32x128xf32>
      %cst_14 = arith.constant 0.000000e+00 : f32
      %16 = vector.broadcast %cst_14 : f32 to vector<32x128xf32>
      %17 = arith.cmpf oge, %15, %16 : vector<32x128xf32>
      %cst_15 = arith.constant 0.00999999977 : f32
      %18 = vector.broadcast %cst_15 : f32 to vector<32x128xf32>
      %19 = arith.mulf %18, %15 : vector<32x128xf32>
      %20 = arith.select %17, %15, %19 : vector<32x128xi1>, vector<32x128xf32>
      %c0_16 = arith.constant 0 : index
      %c0_17 = arith.constant 0 : index
      %21 = vector.load %arg6[%c0_16, %c0_17] : memref<32x128xf32, #tpu.memory_space<vmem>>, vector<32x128xf32>
      tpu.vector_store %arg6[%c0_16, %c0_17], %20 {strides = array<i32>} : memref<32x128xf32, #tpu.memory_space<vmem>>, vector<32x128xf32>,
    } else {
    }
    return
  }
  func.func @transform_0(%arg0: i32, %arg1: i32, %arg2: i32) -> (i32, i32) {
    %c0_i32 = arith.constant 0 : i32
    return %arg0, %arg2 : i32, i32
  }
  func.func @transform_1(%arg0: i32, %arg1: i32, %arg2: i32) -> (i32, i32) {
    %c0_i32 = arith.constant 0 : i32
    return %arg2, %arg1 : i32, i32
  }
  func.func @transform_2(%arg0: i32, %arg1: i32, %arg2: i32) -> (i32, i32) {
    %c0_i32 = arith.constant 0 : i32
    %c0_i32_0 = arith.constant 0 : i32
    return %c0_i32, %arg1 : i32, i32
  }
  func.func @transform_3(%arg0: i32, %arg1: i32, %arg2: i32) -> (i32, i32) {
    %c0_i32 = arith.constant 0 : i32
    return %arg0, %arg1 : i32, i32
  }
}

module attributes {stable_mosaic.version = 11 : i64} {
  func.func @_gemm_bias_lrelu_kernel(%arg0: i32, %arg1: i32, %arg2: i32, %arg3: memref<8x256xf32, #tpu.memory_space<vmem>>, %arg4: memref<256x128xf32, #tpu.memory_space<vmem>>, %arg5: memref<1x128xf32, #tpu.memory_space<vmem>>, %arg6: memref<8x128xf32, #tpu.memory_space<vmem>>, %arg7: memref<8x128xf32, #tpu.memory_space<vmem>>) attributes {dimension_semantics = [#tpu.dimension_semantics<parallel>, #tpu.dimension_semantics<parallel>, #tpu.dimension_semantics<arbitrary>], iteration_bounds = array<i64: 1, 1, 1>, scalar_prefetch = 0 : i64, scratch_operands = 1 : i64, tpu.core_type = #tpu.core_type<tc>, window_params = [{transform_indices = @transform_0, window_bounds = array<i64: 8, 256>}, {transform_indices = @transform_1, window_bounds = array<i64: 256, 128>}, {transform_indices = @transform_2, window_bounds = array<i64: 1, 128>}, {transform_indices = @transform_3, window_bounds = array<i64: 8, 128>}]} {
    %c0_i32 = arith.constant 0 : i32
    %0 = arith.cmpi eq, %arg2, %c0_i32 : i32
    %1 = arith.extui %0 : i1 to i32
    %c0_i32_0 = arith.constant 0 : i32
    %2 = arith.cmpi ne, %1, %c0_i32_0 : i32
    scf.if %2 {
      %cst_10 = arith.constant 0.000000e+00 : f32
      %12 = vector.broadcast %cst_10 : f32 to vector<8x128xf32>
      %c0_11 = arith.constant 0 : index
      %c0_12 = arith.constant 0 : index
      %13 = vector.load %arg7[%c0_11, %c0_12] : memref<8x128xf32, #tpu.memory_space<vmem>>, vector<8x128xf32>
      tpu.vector_store %arg7[%c0_11, %c0_12], %12 {strides = array<i32>} : memref<8x128xf32, #tpu.memory_space<vmem>>, vector<8x128xf32>,
    } else {
    }
    %c0 = arith.constant 0 : index
    %c0_1 = arith.constant 0 : index
    %3 = vector.load %arg7[%c0, %c0_1] : memref<8x128xf32, #tpu.memory_space<vmem>>, vector<8x128xf32>
    %c0_2 = arith.constant 0 : index
    %c0_3 = arith.constant 0 : index
    %4 = vector.load %arg3[%c0_2, %c0_3] : memref<8x256xf32, #tpu.memory_space<vmem>>, vector<8x256xf32>
    %c0_4 = arith.constant 0 : index
    %c0_5 = arith.constant 0 : index
    %5 = vector.load %arg4[%c0_4, %c0_5] : memref<256x128xf32, #tpu.memory_space<vmem>>, vector<256x128xf32>
    %cst = arith.constant dense<0.000000e+00> : vector<8x128xf32>
    %6 = tpu.matmul %4, %5, %cst {dimension_numbers = #tpu.dot_dimension_numbers<[1], [0], [0], [1], [0, 0, 1, 1], [], []>} : vector<8x256xf32>, vector<256x128xf32>, vector<8x128xf32> -> vector<8x128xf32>
    %7 = arith.addf %3, %6 : vector<8x128xf32>
    %c0_6 = arith.constant 0 : index
    %c0_7 = arith.constant 0 : index
    %8 = vector.load %arg7[%c0_6, %c0_7] : memref<8x128xf32, #tpu.memory_space<vmem>>, vector<8x128xf32>
    tpu.vector_store %arg7[%c0_6, %c0_7], %7 {strides = array<i32>} : memref<8x128xf32, #tpu.memory_space<vmem>>, vector<8x128xf32>,
    %c0_i32_8 = arith.constant 0 : i32
    %9 = arith.cmpi eq, %arg2, %c0_i32_8 : i32
    %10 = arith.extui %9 : i1 to i32
    %c0_i32_9 = arith.constant 0 : i32
    %11 = arith.cmpi ne, %10, %c0_i32_9 : i32
    scf.if %11 {
      %c0_10 = arith.constant 0 : index
      %c0_11 = arith.constant 0 : index
      %12 = vector.load %arg7[%c0_10, %c0_11] : memref<8x128xf32, #tpu.memory_space<vmem>>, vector<8x128xf32>
      %c0_12 = arith.constant 0 : index
      %c0_13 = arith.constant 0 : index
      %13 = vector.load %arg5[%c0_12, %c0_13] : memref<1x128xf32, #tpu.memory_space<vmem>>, vector<1x128xf32>
      %14 = vector.broadcast %13 : vector<1x128xf32> to vector<8x128xf32>
      %15 = arith.addf %12, %14 : vector<8x128xf32>
      %cst_14 = arith.constant 0.000000e+00 : f32
      %16 = vector.broadcast %cst_14 : f32 to vector<8x128xf32>
      %17 = arith.cmpf oge, %15, %16 : vector<8x128xf32>
      %cst_15 = arith.constant 0.00999999977 : f32
      %18 = vector.broadcast %cst_15 : f32 to vector<8x128xf32>
      %19 = arith.mulf %18, %15 : vector<8x128xf32>
      %20 = arith.select %17, %15, %19 : vector<8x128xi1>, vector<8x128xf32>
      %c0_16 = arith.constant 0 : index
      %c0_17 = arith.constant 0 : index
      %21 = vector.load %arg6[%c0_16, %c0_17] : memref<8x128xf32, #tpu.memory_space<vmem>>, vector<8x128xf32>
      tpu.vector_store %arg6[%c0_16, %c0_17], %20 {strides = array<i32>} : memref<8x128xf32, #tpu.memory_space<vmem>>, vector<8x128xf32>,
    } else {
    }
    return
  }
  func.func @transform_0(%arg0: i32, %arg1: i32, %arg2: i32) -> (i32, i32) {
    %c0_i32 = arith.constant 0 : i32
    return %arg0, %arg2 : i32, i32
  }
  func.func @transform_1(%arg0: i32, %arg1: i32, %arg2: i32) -> (i32, i32) {
    %c0_i32 = arith.constant 0 : i32
    return %arg2, %arg1 : i32, i32
  }
  func.func @transform_2(%arg0: i32, %arg1: i32, %arg2: i32) -> (i32, i32) {
    %c0_i32 = arith.constant 0 : i32
    %c0_i32_0 = arith.constant 0 : i32
    return %c0_i32, %arg1 : i32, i32
  }
  func.func @transform_3(%arg0: i32, %arg1: i32, %arg2: i32) -> (i32, i32) {
    %c0_i32 = arith.constant 0 : i32
    return %arg0, %arg1 : i32, i32
  }
}

module attributes {stable_mosaic.version = 11 : i64} {
  func.func @_gemm_bias_lrelu_kernel(%arg0: i32, %arg1: i32, %arg2: i32, %arg3: memref<8x128xf32, #tpu.memory_space<vmem>>, %arg4: memref<128x128xf32, #tpu.memory_space<vmem>>, %arg5: memref<1x128xf32, #tpu.memory_space<vmem>>, %arg6: memref<8x128xf32, #tpu.memory_space<vmem>>, %arg7: memref<8x128xf32, #tpu.memory_space<vmem>>) attributes {dimension_semantics = [#tpu.dimension_semantics<parallel>, #tpu.dimension_semantics<parallel>, #tpu.dimension_semantics<arbitrary>], iteration_bounds = array<i64: 1, 1, 1>, scalar_prefetch = 0 : i64, scratch_operands = 1 : i64, tpu.core_type = #tpu.core_type<tc>, window_params = [{transform_indices = @transform_0, window_bounds = array<i64: 8, 128>}, {transform_indices = @transform_1, window_bounds = array<i64: 128, 128>}, {transform_indices = @transform_2, window_bounds = array<i64: 1, 128>}, {transform_indices = @transform_3, window_bounds = array<i64: 8, 128>}]} {
    %c0_i32 = arith.constant 0 : i32
    %0 = arith.cmpi eq, %arg2, %c0_i32 : i32
    %1 = arith.extui %0 : i1 to i32
    %c0_i32_0 = arith.constant 0 : i32
    %2 = arith.cmpi ne, %1, %c0_i32_0 : i32
    scf.if %2 {
      %cst_10 = arith.constant 0.000000e+00 : f32
      %12 = vector.broadcast %cst_10 : f32 to vector<8x128xf32>
      %c0_11 = arith.constant 0 : index
      %c0_12 = arith.constant 0 : index
      %13 = vector.load %arg7[%c0_11, %c0_12] : memref<8x128xf32, #tpu.memory_space<vmem>>, vector<8x128xf32>
      tpu.vector_store %arg7[%c0_11, %c0_12], %12 {strides = array<i32>} : memref<8x128xf32, #tpu.memory_space<vmem>>, vector<8x128xf32>,
    } else {
    }
    %c0 = arith.constant 0 : index
    %c0_1 = arith.constant 0 : index
    %3 = vector.load %arg7[%c0, %c0_1] : memref<8x128xf32, #tpu.memory_space<vmem>>, vector<8x128xf32>
    %c0_2 = arith.constant 0 : index
    %c0_3 = arith.constant 0 : index
    %4 = vector.load %arg3[%c0_2, %c0_3] : memref<8x128xf32, #tpu.memory_space<vmem>>, vector<8x128xf32>
    %c0_4 = arith.constant 0 : index
    %c0_5 = arith.constant 0 : index
    %5 = vector.load %arg4[%c0_4, %c0_5] : memref<128x128xf32, #tpu.memory_space<vmem>>, vector<128x128xf32>
    %cst = arith.constant dense<0.000000e+00> : vector<8x128xf32>
    %6 = tpu.matmul %4, %5, %cst {dimension_numbers = #tpu.dot_dimension_numbers<[1], [0], [0], [1], [0, 0, 1, 1], [], []>} : vector<8x128xf32>, vector<128x128xf32>, vector<8x128xf32> -> vector<8x128xf32>
    %7 = arith.addf %3, %6 : vector<8x128xf32>
    %c0_6 = arith.constant 0 : index
    %c0_7 = arith.constant 0 : index
    %8 = vector.load %arg7[%c0_6, %c0_7] : memref<8x128xf32, #tpu.memory_space<vmem>>, vector<8x128xf32>
    tpu.vector_store %arg7[%c0_6, %c0_7], %7 {strides = array<i32>} : memref<8x128xf32, #tpu.memory_space<vmem>>, vector<8x128xf32>,
    %c0_i32_8 = arith.constant 0 : i32
    %9 = arith.cmpi eq, %arg2, %c0_i32_8 : i32
    %10 = arith.extui %9 : i1 to i32
    %c0_i32_9 = arith.constant 0 : i32
    %11 = arith.cmpi ne, %10, %c0_i32_9 : i32
    scf.if %11 {
      %c0_10 = arith.constant 0 : index
      %c0_11 = arith.constant 0 : index
      %12 = vector.load %arg7[%c0_10, %c0_11] : memref<8x128xf32, #tpu.memory_space<vmem>>, vector<8x128xf32>
      %c0_12 = arith.constant 0 : index
      %c0_13 = arith.constant 0 : index
      %13 = vector.load %arg5[%c0_12, %c0_13] : memref<1x128xf32, #tpu.memory_space<vmem>>, vector<1x128xf32>
      %14 = vector.broadcast %13 : vector<1x128xf32> to vector<8x128xf32>
      %15 = arith.addf %12, %14 : vector<8x128xf32>
      %c0_14 = arith.constant 0 : index
      %c0_15 = arith.constant 0 : index
      %16 = vector.load %arg6[%c0_14, %c0_15] : memref<8x128xf32, #tpu.memory_space<vmem>>, vector<8x128xf32>
      tpu.vector_store %arg6[%c0_14, %c0_15], %15 {strides = array<i32>} : memref<8x128xf32, #tpu.memory_space<vmem>>, vector<8x128xf32>,
    } else {
    }
    return
  }
  func.func @transform_0(%arg0: i32, %arg1: i32, %arg2: i32) -> (i32, i32) {
    %c0_i32 = arith.constant 0 : i32
    return %arg0, %arg2 : i32, i32
  }
  func.func @transform_1(%arg0: i32, %arg1: i32, %arg2: i32) -> (i32, i32) {
    %c0_i32 = arith.constant 0 : i32
    return %arg2, %arg1 : i32, i32
  }
  func.func @transform_2(%arg0: i32, %arg1: i32, %arg2: i32) -> (i32, i32) {
    %c0_i32 = arith.constant 0 : i32
    %c0_i32_0 = arith.constant 0 : i32
    return %c0_i32, %arg1 : i32, i32
  }
  func.func @transform_3(%arg0: i32, %arg1: i32, %arg2: i32) -> (i32, i32) {
    %c0_i32 = arith.constant 0 : i32
    return %arg0, %arg1 : i32, i32
  }
}

module attributes {stable_mosaic.version = 11 : i64} {
  func.func @_gemm_bias_lrelu_kernel(%arg0: i32, %arg1: i32, %arg2: i32, %arg3: memref<8x384xf32, #tpu.memory_space<vmem>>, %arg4: memref<384x128xf32, #tpu.memory_space<vmem>>, %arg5: memref<1x128xf32, #tpu.memory_space<vmem>>, %arg6: memref<8x128xf32, #tpu.memory_space<vmem>>, %arg7: memref<8x128xf32, #tpu.memory_space<vmem>>) attributes {dimension_semantics = [#tpu.dimension_semantics<parallel>, #tpu.dimension_semantics<parallel>, #tpu.dimension_semantics<arbitrary>], iteration_bounds = array<i64: 1, 1, 1>, scalar_prefetch = 0 : i64, scratch_operands = 1 : i64, tpu.core_type = #tpu.core_type<tc>, window_params = [{transform_indices = @transform_0, window_bounds = array<i64: 8, 384>}, {transform_indices = @transform_1, window_bounds = array<i64: 384, 128>}, {transform_indices = @transform_2, window_bounds = array<i64: 1, 128>}, {transform_indices = @transform_3, window_bounds = array<i64: 8, 128>}]} {
    %c0_i32 = arith.constant 0 : i32
    %0 = arith.cmpi eq, %arg2, %c0_i32 : i32
    %1 = arith.extui %0 : i1 to i32
    %c0_i32_0 = arith.constant 0 : i32
    %2 = arith.cmpi ne, %1, %c0_i32_0 : i32
    scf.if %2 {
      %cst_10 = arith.constant 0.000000e+00 : f32
      %12 = vector.broadcast %cst_10 : f32 to vector<8x128xf32>
      %c0_11 = arith.constant 0 : index
      %c0_12 = arith.constant 0 : index
      %13 = vector.load %arg7[%c0_11, %c0_12] : memref<8x128xf32, #tpu.memory_space<vmem>>, vector<8x128xf32>
      tpu.vector_store %arg7[%c0_11, %c0_12], %12 {strides = array<i32>} : memref<8x128xf32, #tpu.memory_space<vmem>>, vector<8x128xf32>,
    } else {
    }
    %c0 = arith.constant 0 : index
    %c0_1 = arith.constant 0 : index
    %3 = vector.load %arg7[%c0, %c0_1] : memref<8x128xf32, #tpu.memory_space<vmem>>, vector<8x128xf32>
    %c0_2 = arith.constant 0 : index
    %c0_3 = arith.constant 0 : index
    %4 = vector.load %arg3[%c0_2, %c0_3] : memref<8x384xf32, #tpu.memory_space<vmem>>, vector<8x384xf32>
    %c0_4 = arith.constant 0 : index
    %c0_5 = arith.constant 0 : index
    %5 = vector.load %arg4[%c0_4, %c0_5] : memref<384x128xf32, #tpu.memory_space<vmem>>, vector<384x128xf32>
    %cst = arith.constant dense<0.000000e+00> : vector<8x128xf32>
    %6 = tpu.matmul %4, %5, %cst {dimension_numbers = #tpu.dot_dimension_numbers<[1], [0], [0], [1], [0, 0, 1, 1], [], []>} : vector<8x384xf32>, vector<384x128xf32>, vector<8x128xf32> -> vector<8x128xf32>
    %7 = arith.addf %3, %6 : vector<8x128xf32>
    %c0_6 = arith.constant 0 : index
    %c0_7 = arith.constant 0 : index
    %8 = vector.load %arg7[%c0_6, %c0_7] : memref<8x128xf32, #tpu.memory_space<vmem>>, vector<8x128xf32>
    tpu.vector_store %arg7[%c0_6, %c0_7], %7 {strides = array<i32>} : memref<8x128xf32, #tpu.memory_space<vmem>>, vector<8x128xf32>,
    %c0_i32_8 = arith.constant 0 : i32
    %9 = arith.cmpi eq, %arg2, %c0_i32_8 : i32
    %10 = arith.extui %9 : i1 to i32
    %c0_i32_9 = arith.constant 0 : i32
    %11 = arith.cmpi ne, %10, %c0_i32_9 : i32
    scf.if %11 {
      %c0_10 = arith.constant 0 : index
      %c0_11 = arith.constant 0 : index
      %12 = vector.load %arg7[%c0_10, %c0_11] : memref<8x128xf32, #tpu.memory_space<vmem>>, vector<8x128xf32>
      %c0_12 = arith.constant 0 : index
      %c0_13 = arith.constant 0 : index
      %13 = vector.load %arg5[%c0_12, %c0_13] : memref<1x128xf32, #tpu.memory_space<vmem>>, vector<1x128xf32>
      %14 = vector.broadcast %13 : vector<1x128xf32> to vector<8x128xf32>
      %15 = arith.addf %12, %14 : vector<8x128xf32>
      %c0_14 = arith.constant 0 : index
      %c0_15 = arith.constant 0 : index
      %16 = vector.load %arg6[%c0_14, %c0_15] : memref<8x128xf32, #tpu.memory_space<vmem>>, vector<8x128xf32>
      tpu.vector_store %arg6[%c0_14, %c0_15], %15 {strides = array<i32>} : memref<8x128xf32, #tpu.memory_space<vmem>>, vector<8x128xf32>,
    } else {
    }
    return
  }
  func.func @transform_0(%arg0: i32, %arg1: i32, %arg2: i32) -> (i32, i32) {
    %c0_i32 = arith.constant 0 : i32
    return %arg0, %arg2 : i32, i32
  }
  func.func @transform_1(%arg0: i32, %arg1: i32, %arg2: i32) -> (i32, i32) {
    %c0_i32 = arith.constant 0 : i32
    return %arg2, %arg1 : i32, i32
  }
  func.func @transform_2(%arg0: i32, %arg1: i32, %arg2: i32) -> (i32, i32) {
    %c0_i32 = arith.constant 0 : i32
    %c0_i32_0 = arith.constant 0 : i32
    return %c0_i32, %arg1 : i32, i32
  }
  func.func @transform_3(%arg0: i32, %arg1: i32, %arg2: i32) -> (i32, i32) {
    %c0_i32 = arith.constant 0 : i32
    return %arg0, %arg1 : i32, i32
  }
}

</mosaic_0001>

<bundles_post_ra>
// kernel: discriminator_forward.5
= control target key start
LH: loop header
LB: loop body
LE: loop exit
PB: predicated region body
PF: predicated region fallthrough
CT: control target
= control target key end

     0   :  { %s691_s1 = inlined_call_operand.vmem [shape: f32[128,128], index: 1, kind: input, shape index: {}]   ;;  %s692_s0 = inlined_call_operand.vmem [shape: f32[128,128], index: 0, kind: input, shape index: {}]   ;;  %s693_s2 = inlined_call_operand.vmem [shape: f32[1,128], index: 2, kind: input, shape index: {}]   ;;  %s694_s3 = inlined_call_operand.vmem [shape: f32[128,128], index: 3, kind: output, shape index: {}]  }
   0x1   :  { %v66_v0 = vld [vmem:[%s691_s1] sm:$0xff]  ;;  %v67_v1 = vld [vmem:[%s691_s1 + $0x8] sm:$0xff]  ;;  %v68_v2 = vld [vmem:[%s691_s1 + $0x10] sm:$0xff] }
   0x2   :  { %v458_v3 = vpack.c.bf16 %v67_v1, %v66_v0  ;;  %v69_v4 = vld [vmem:[%s691_s1 + $0x18] sm:$0xff]  ;;  %v70_v6 = vld [vmem:[%s691_s1 + $0x20] sm:$0xff]  ;;  %v71_v7 = vld [vmem:[%s691_s1 + $0x28] sm:$0xff] }
   0x3   :  { %v462_v5 = vpack.c.bf16 %v69_v4, %v68_v2  ;;  %v466_v8 = vpack.c.bf16 %v71_v7, %v70_v6  ;;  %v50_v9 = vld [vmem:[%s692_s0] sm:$0xff]  ;;  %v72_v11 = vld [vmem:[%s691_s1 + $0x30] sm:$0xff]  ;;  %v73_v12 = vld [vmem:[%s691_s1 + $0x38] sm:$0xff] }
   0x4   :  { %459 = vmatprep.subr.bf16.mxu0 %v458_v3  ;;  %490 = vmatprep.subr.bf16.mxu1 %v458_v3  ;;  %v58_v10 = vld [vmem:[%s692_s0 + $0x40] sm:$0xff]  ;;  %v470_v13 = vpack.c.bf16 %v73_v12, %v72_v11  ;;  %v75_v15 = vld [vmem:[%s691_s1 + $0x48] sm:$0xff]  ;;  %v76_v17 = vld [vmem:[%s691_s1 + $0x50] sm:$0xff] }
   0x5   :  { %461 = vmatpush3.bf16.msra.mxu0 %v458_v3  ;;  %498 = vmatpush3.bf16.msra.mxu1 %v458_v3  ;;  %v74_v14 = vld [vmem:[%s691_s1 + $0x40] sm:$0xff]  ;;  %v77_v18 = vld [vmem:[%s691_s1 + $0x58] sm:$0xff]  ;;  %v79_v21 = vld [vmem:[%s691_s1 + $0x68] sm:$0xff] }
   0x6   :  { %463 = vmatprep.subr.bf16.mxu0 %v462_v5  ;;  %491 = vmatprep.subr.bf16.mxu1 %v462_v5  ;;  %v474_v16 = vpack.c.bf16 %v75_v15, %v74_v14  ;;  %v478_v19 = vpack.c.bf16 %v77_v18, %v76_v17  ;;  %v78_v20 = vld [vmem:[%s691_s1 + $0x60] sm:$0xff]  ;;  %v80_v23 = vld [vmem:[%s691_s1 + $0x70] sm:$0xff]  ;;  %v81_v24 = vld [vmem:[%s691_s1 + $0x78] sm:$0xff] }
   0x7   :  { %434 = vmatprep.mubr.f32.mxu0 %v50_v9  ;;  %446 = vmatprep.mubr.f32.mxu1 %v58_v10  ;;  %v482_v22 = vpack.c.bf16 %v79_v21, %v78_v20  ;;  %v486_v25 = vpack.c.bf16 %v81_v24, %v80_v23  ;;  %v51_v26 = vld [vmem:[%s692_s0 + $0x8] sm:$0xff]  ;;  %v52_v28 = vld [vmem:[%s692_s0 + $0x10] sm:$0xff]  ;;  %v53_v30 = vld [vmem:[%s692_s0 + $0x18] sm:$0xff] }
   0x8   :  { %v59_v27 = vld [vmem:[%s692_s0 + $0x48] sm:$0xff]  ;;  %v60_v29 = vld [vmem:[%s692_s0 + $0x50] sm:$0xff]  ;;  %v61_v31 = vld [vmem:[%s692_s0 + $0x58] sm:$0xff] }
   0x9   :  { %465 = vmatpush3.bf16.msra.mxu0 %v462_v5  ;;  %499 = vmatpush3.bf16.msra.mxu1 %v462_v5  ;;  %v54_v32 = vld [vmem:[%s692_s0 + $0x20] sm:$0xff]  ;;  %v55_v34 = vld [vmem:[%s692_s0 + $0x28] sm:$0xff]  ;;  %v56_v36 = vld [vmem:[%s692_s0 + $0x30] sm:$0xff] }
   0xa   :  { %467 = vmatprep.subr.bf16.mxu0 %v466_v8  ;;  %492 = vmatprep.subr.bf16.mxu1 %v466_v8  ;;  %v62_v33 = vld [vmem:[%s692_s0 + $0x60] sm:$0xff]  ;;  %v63_v35 = vld [vmem:[%s692_s0 + $0x68] sm:$0xff]  ;;  %v64_v37 = vld [vmem:[%s692_s0 + $0x70] sm:$0xff] }
   0xb   :  { %v57_v38 = vld [vmem:[%s692_s0 + $0x38] sm:$0xff]  ;;  %v625_v40 = vld [vmem:[%s693_s2] ss:$0 sm:$0xff] }
   0xc   :  { %v65_v39 = vld [vmem:[%s692_s0 + $0x78] sm:$0xff] }
   0xd   :  { %469 = vmatpush3.bf16.msra.mxu0 %v466_v8  ;;  %500 = vmatpush3.bf16.msra.mxu1 %v466_v8 }
   0xe   :  { %471 = vmatprep.subr.bf16.mxu0 %v470_v13  ;;  %493 = vmatprep.subr.bf16.mxu1 %v470_v13 }
  0x11   :  { %473 = vmatpush3.bf16.msra.mxu0 %v470_v13  ;;  %501 = vmatpush3.bf16.msra.mxu1 %v470_v13 }
  0x12   :  { %475 = vmatprep.subr.bf16.mxu0 %v474_v16  ;;  %494 = vmatprep.subr.bf16.mxu1 %v474_v16 }
  0x15   :  { %477 = vmatpush3.bf16.msra.mxu0 %v474_v16  ;;  %502 = vmatpush3.bf16.msra.mxu1 %v474_v16 }
  0x16   :  { %479 = vmatprep.subr.bf16.mxu0 %v478_v19  ;;  %495 = vmatprep.subr.bf16.mxu1 %v478_v19 }
  0x19   :  { %481 = vmatpush3.bf16.msra.mxu0 %v478_v19  ;;  %503 = vmatpush3.bf16.msra.mxu1 %v478_v19 }
  0x1a   :  { %483 = vmatprep.subr.bf16.mxu0 %v482_v22  ;;  %496 = vmatprep.subr.bf16.mxu1 %v482_v22 }
  0x1d   :  { %485 = vmatpush3.bf16.msra.mxu0 %v482_v22  ;;  %504 = vmatpush3.bf16.msra.mxu1 %v482_v22 }
  0x1e   :  { %487 = vmatprep.subr.bf16.mxu0 %v486_v25  ;;  %497 = vmatprep.subr.bf16.mxu1 %v486_v25 }
  0x21   :  { %489 = vmatpush3.bf16.msra.mxu0 %v486_v25  ;;  %505 = vmatpush3.bf16.msra.mxu1 %v486_v25 }
  0x24   :  { %435 = vmatmul.mubr.f32.vlgmr.msra.gmra.mrb[0].mxu0 %v51_v26  ;;  %447 = vmatmul.mubr.f32.vlgmr.msra.gmra.mrb[0].mxu1 %v59_v27 }
  0x25   :  { %437 = vmatprep.mubr.f32.mxu0 %v52_v28  ;;  %449 = vmatprep.mubr.f32.mxu1 %v60_v29 }
  0x28   :  { %438 = vmatmul.mubr.f32.gmra.mrb[2].mxu0 %v53_v30  ;;  %450 = vmatmul.mubr.f32.gmra.mrb[2].mxu1 %v61_v31 }
  0x29   :  { %440 = vmatprep.mubr.f32.mxu0 %v54_v32  ;;  %452 = vmatprep.mubr.f32.mxu1 %v62_v33 }
  0x2c   :  { %441 = vmatmul.mubr.f32.gmra.mrb[4].mxu0 %v55_v34  ;;  %453 = vmatmul.mubr.f32.gmra.mrb[4].mxu1 %v63_v35 }
  0x2d   :  { %443 = vmatprep.mubr.f32.mxu0 %v56_v36  ;;  %455 = vmatprep.mubr.f32.mxu1 %v64_v37 }
  0x30   :  { %444 = vmatmul.mubr.f32.gmra.mrb[6].mxu0 %v57_v38  ;;  %456 = vmatmul.mubr.f32.gmra.mrb[6].mxu1 %v65_v39 }
  0xf7   :  { %v436_v41 = vpop.f32.mrb[0].mxu0  ;;  %v448_v42 = vpop.f32.mrb[0].mxu1 }
  0xf8   :  { %v286_v43 = vadd.f32 %v436_v41, %v625_v40  ;;  %v294_v44 = vadd.f32 %v448_v42, %v625_v40  ;;  %v148_v45 = vpop.f32.mrb[1].mxu0  ;;  %v188_v46 = vpop.f32.mrb[1].mxu1 }
  0xf9   :  { %v285_v47 = vadd.f32 %v625_v40, %v148_v45  ;;  %v293_v48 = vadd.f32 %v625_v40, %v188_v46 }
  0xfa   :  { %vm302_vm0 = vcmp.ge.f32.partialorder %v286_v43, 0.0  ;;  %v318_v49 = vmul.f32 0.01, %v286_v43  ;;  %vm310_vm1 = vcmp.ge.f32.partialorder %v294_v44, 0.0  ;;  %v326_v50 = vmul.f32 0.01, %v294_v44 }
  0xfb   :  { %vm301_vm2 = vcmp.ge.f32.partialorder %v285_v47, 0.0  ;;  %v317_v51 = vmul.f32 0.01, %v285_v47  ;;  %vm309_vm3 = vcmp.ge.f32.partialorder %v293_v48, 0.0  ;;  %v325_v52 = vmul.f32 0.01, %v293_v48 }
  0xfc   :  { %v334_v53 = vsel %vm302_vm0, %v286_v43, %v318_v49  ;;  %v342_v54 = vsel %vm310_vm1, %v294_v44, %v326_v50  ;;  %v439_v55 = vpop.f32.mrb[2].mxu0  ;;  %v451_v56 = vpop.f32.mrb[2].mxu1 }
  0xfd   :  { %350 = vst [vmem:[%s694_s3 + $0x8] sm:$0xff] %v334_v53  ;;  %358 = vst [vmem:[%s694_s3 + $0x48] sm:$0xff] %v342_v54  ;;  %v333_v57 = vsel %vm301_vm2, %v285_v47, %v317_v51  ;;  %v341_v58 = vsel %vm309_vm3, %v293_v48, %v325_v52  ;;  %v288_v59 = vadd.f32 %v439_v55, %v625_v40  ;;  %v158_v61 = vpop.f32.mrb[3].mxu0  ;;  %v198_v62 = vpop.f32.mrb[3].mxu1 }
  0xfe   :  { %v296_v60 = vadd.f32 %v451_v56, %v625_v40  ;;  %349 = vst [vmem:[%s694_s3] sm:$0xff] %v333_v57  ;;  %357 = vst [vmem:[%s694_s3 + $0x40] sm:$0xff] %v341_v58  ;;  %v287_v63 = vadd.f32 %v625_v40, %v158_v61  ;;  %v295_v0 = vadd.f32 %v625_v40, %v198_v62 }
  0xff   :  { %vm304_vm4 = vcmp.ge.f32.partialorder %v288_v59, 0.0  ;;  %v320_v1 = vmul.f32 0.01, %v288_v59  ;;  %v442_v7 = vpop.f32.mrb[4].mxu0  ;;  %v454_v8 = vpop.f32.mrb[4].mxu1 }
 0x100   :  { %vm312_vm5 = vcmp.ge.f32.partialorder %v296_v60, 0.0  ;;  %v328_v2 = vmul.f32 0.01, %v296_v60  ;;  %vm303_vm6 = vcmp.ge.f32.partialorder %v287_v63, 0.0  ;;  %v319_v3 = vmul.f32 0.01, %v287_v63 }
 0x101   :  { %vm311_vm7 = vcmp.ge.f32.partialorder %v295_v0, 0.0  ;;  %v327_v4 = vmul.f32 0.01, %v295_v0  ;;  %v336_v5 = vsel %vm304_vm4, %v288_v59, %v320_v1  ;;  %v290_v11 = vadd.f32 %v442_v7, %v625_v40  ;;  %v168_v13 = vpop.f32.mrb[5].mxu0  ;;  %v208_v14 = vpop.f32.mrb[5].mxu1 }
 0x102   :  { %v344_v6 = vsel %vm312_vm5, %v296_v60, %v328_v2  ;;  %352 = vst [vmem:[%s694_s3 + $0x18] sm:$0xff] %v336_v5  ;;  %v335_v9 = vsel %vm303_vm6, %v287_v63, %v319_v3  ;;  %v298_v12 = vadd.f32 %v454_v8, %v625_v40  ;;  %v289_v15 = vadd.f32 %v625_v40, %v168_v13 }
 0x103   :  { %360 = vst [vmem:[%s694_s3 + $0x58] sm:$0xff] %v344_v6  ;;  %v343_v10 = vsel %vm311_vm7, %v295_v0, %v327_v4  ;;  %351 = vst [vmem:[%s694_s3 + $0x10] sm:$0xff] %v335_v9  ;;  %v297_v16 = vadd.f32 %v625_v40, %v208_v14  ;;  %v445_v17 = vpop.f32.mrb[6].mxu0  ;;  %v457_v18 = vpop.f32.mrb[6].mxu1  ;;  %vm306_vm8 = vcmp.ge.f32.partialorder %v290_v11, 0.0 }
 0x104   :  { %359 = vst [vmem:[%s694_s3 + $0x50] sm:$0xff] %v343_v10  ;;  %v322_v19 = vmul.f32 0.01, %v290_v11  ;;  %vm314_vm9 = vcmp.ge.f32.partialorder %v298_v12, 0.0  ;;  %v330_v20 = vmul.f32 0.01, %v298_v12  ;;  %v292_v25 = vadd.f32 %v445_v17, %v625_v40 }
 0x105   :  { %vm305_vm10 = vcmp.ge.f32.partialorder %v289_v15, 0.0  ;;  %v321_v21 = vmul.f32 0.01, %v289_v15  ;;  %vm313_vm11 = vcmp.ge.f32.partialorder %v297_v16, 0.0  ;;  %v329_v22 = vmul.f32 0.01, %v297_v16 }
 0x106   :  { %v338_v23 = vsel %vm306_vm8, %v290_v11, %v322_v19  ;;  %v346_v24 = vsel %vm314_vm9, %v298_v12, %v330_v20  ;;  %v300_v26 = vadd.f32 %v457_v18, %v625_v40  ;;  %v178_v27 = vpop.f32.mrb[7].mxu0  ;;  %v218_v28 = vpop.f32.mrb[7].mxu1  ;;  %vm308_vm12 = vcmp.ge.f32.partialorder %v292_v25, 0.0 }
 0x107   :  { %354 = vst [vmem:[%s694_s3 + $0x28] sm:$0xff] %v338_v23  ;;  %362 = vst [vmem:[%s694_s3 + $0x68] sm:$0xff] %v346_v24  ;;  %v337_v29 = vsel %vm305_vm10, %v289_v15, %v321_v21  ;;  %v345_v30 = vsel %vm313_vm11, %v297_v16, %v329_v22  ;;  %v291_v31 = vadd.f32 %v625_v40, %v178_v27  ;;  %v324_v33 = vmul.f32 0.01, %v292_v25 }
 0x108   :  { %v299_v32 = vadd.f32 %v625_v40, %v218_v28  ;;  %353 = vst [vmem:[%s694_s3 + $0x20] sm:$0xff] %v337_v29  ;;  %361 = vst [vmem:[%s694_s3 + $0x60] sm:$0xff] %v345_v30  ;;  %vm316_vm13 = vcmp.ge.f32.partialorder %v300_v26, 0.0  ;;  %v332_v34 = vmul.f32 0.01, %v300_v26 }
 0x109   :  { %vm307_vm14 = vcmp.ge.f32.partialorder %v291_v31, 0.0  ;;  %v323_v35 = vmul.f32 0.01, %v291_v31  ;;  %v340_v37 = vsel %vm308_vm12, %v292_v25, %v324_v33 }
 0x10a   :  { %vm315_vm15 = vcmp.ge.f32.partialorder %v299_v32, 0.0  ;;  %v331_v36 = vmul.f32 0.01, %v299_v32  ;;  %v348_v38 = vsel %vm316_vm13, %v300_v26, %v332_v34  ;;  %356 = vst [vmem:[%s694_s3 + $0x38] sm:$0xff] %v340_v37 }
 0x10b   :  { %364 = vst [vmem:[%s694_s3 + $0x78] sm:$0xff] %v348_v38  ;;  %v339_v39 = vsel %vm307_vm14, %v291_v31, %v323_v35 }
 0x10c   :  { %v347_v40 = vsel %vm315_vm15, %v299_v32, %v331_v36  ;;  %355 = vst [vmem:[%s694_s3 + $0x30] sm:$0xff] %v339_v39 }
 0x10d   :  { %363 = vst [vmem:[%s694_s3 + $0x70] sm:$0xff] %v347_v40 }

// kernel: discriminator_forward.6
= control target key start
LH: loop header
LB: loop body
LE: loop exit
PB: predicated region body
PF: predicated region fallthrough
CT: control target
= control target key end

     0   :  { %s379_s1 = inlined_call_operand.vmem [shape: f32[128,128], index: 1, kind: input, shape index: {}]   ;;  %s380_s0 = inlined_call_operand.vmem [shape: f32[32,128], index: 0, kind: input, shape index: {}]   ;;  %s381_s2 = inlined_call_operand.vmem [shape: f32[1,128], index: 2, kind: input, shape index: {}]   ;;  %s382_s3 = inlined_call_operand.vmem [shape: f32[32,128], index: 3, kind: output, shape index: {}]  }
   0x1   :  { %v30_v0 = vld [vmem:[%s379_s1] sm:$0xff]  ;;  %v31_v1 = vld [vmem:[%s379_s1 + $0x8] sm:$0xff]  ;;  %v32_v2 = vld [vmem:[%s379_s1 + $0x10] sm:$0xff] }
   0x2   :  { %v236_v3 = vpack.c.bf16 %v31_v1, %v30_v0  ;;  %v33_v4 = vld [vmem:[%s379_s1 + $0x18] sm:$0xff]  ;;  %v34_v6 = vld [vmem:[%s379_s1 + $0x20] sm:$0xff]  ;;  %v35_v7 = vld [vmem:[%s379_s1 + $0x28] sm:$0xff] }
   0x3   :  { %v240_v5 = vpack.c.bf16 %v33_v4, %v32_v2  ;;  %v244_v8 = vpack.c.bf16 %v35_v7, %v34_v6  ;;  %v26_v9 = vld [vmem:[%s380_s0] sm:$0xff]  ;;  %v28_v10 = vld [vmem:[%s380_s0 + $0x10] sm:$0xff]  ;;  %v37_v12 = vld [vmem:[%s379_s1 + $0x38] sm:$0xff] }
   0x4   :  { %237 = vmatprep.subr.bf16.mxu0 %v236_v3  ;;  %268 = vmatprep.subr.bf16.mxu1 %v236_v3  ;;  %v36_v11 = vld [vmem:[%s379_s1 + $0x30] sm:$0xff]  ;;  %v38_v14 = vld [vmem:[%s379_s1 + $0x40] sm:$0xff]  ;;  %v39_v15 = vld [vmem:[%s379_s1 + $0x48] sm:$0xff] }
   0x5   :  { %239 = vmatpush3.bf16.msra.mxu0 %v236_v3  ;;  %276 = vmatpush3.bf16.msra.mxu1 %v236_v3  ;;  %v248_v13 = vpack.c.bf16 %v37_v12, %v36_v11  ;;  %v252_v16 = vpack.c.bf16 %v39_v15, %v38_v14  ;;  %v40_v17 = vld [vmem:[%s379_s1 + $0x50] sm:$0xff]  ;;  %v41_v18 = vld [vmem:[%s379_s1 + $0x58] sm:$0xff]  ;;  %v42_v20 = vld [vmem:[%s379_s1 + $0x60] sm:$0xff] }
   0x6   :  { %241 = vmatprep.subr.bf16.mxu0 %v240_v5  ;;  %269 = vmatprep.subr.bf16.mxu1 %v240_v5  ;;  %v256_v19 = vpack.c.bf16 %v41_v18, %v40_v17  ;;  %v43_v21 = vld [vmem:[%s379_s1 + $0x68] sm:$0xff]  ;;  %v44_v23 = vld [vmem:[%s379_s1 + $0x70] sm:$0xff]  ;;  %v45_v24 = vld [vmem:[%s379_s1 + $0x78] sm:$0xff] }
   0x7   :  { %230 = vmatprep.mubr.f32.mxu0 %v26_v9  ;;  %233 = vmatprep.mubr.f32.mxu1 %v28_v10  ;;  %v260_v22 = vpack.c.bf16 %v43_v21, %v42_v20  ;;  %v264_v25 = vpack.c.bf16 %v45_v24, %v44_v23  ;;  %v27_v26 = vld [vmem:[%s380_s0 + $0x8] sm:$0xff]  ;;  %v29_v27 = vld [vmem:[%s380_s0 + $0x18] sm:$0xff]  ;;  %v177_v28 = vld [vmem:[%s381_s2] ss:$0 sm:$0xff] }
   0x9   :  { %243 = vmatpush3.bf16.msra.mxu0 %v240_v5  ;;  %277 = vmatpush3.bf16.msra.mxu1 %v240_v5 }
   0xa   :  { %245 = vmatprep.subr.bf16.mxu0 %v244_v8  ;;  %270 = vmatprep.subr.bf16.mxu1 %v244_v8 }
   0xd   :  { %247 = vmatpush3.bf16.msra.mxu0 %v244_v8  ;;  %278 = vmatpush3.bf16.msra.mxu1 %v244_v8 }
   0xe   :  { %249 = vmatprep.subr.bf16.mxu0 %v248_v13  ;;  %271 = vmatprep.subr.bf16.mxu1 %v248_v13 }
  0x11   :  { %251 = vmatpush3.bf16.msra.mxu0 %v248_v13  ;;  %279 = vmatpush3.bf16.msra.mxu1 %v248_v13 }
  0x12   :  { %253 = vmatprep.subr.bf16.mxu0 %v252_v16  ;;  %272 = vmatprep.subr.bf16.mxu1 %v252_v16 }
  0x15   :  { %255 = vmatpush3.bf16.msra.mxu0 %v252_v16  ;;  %280 = vmatpush3.bf16.msra.mxu1 %v252_v16 }
  0x16   :  { %257 = vmatprep.subr.bf16.mxu0 %v256_v19  ;;  %273 = vmatprep.subr.bf16.mxu1 %v256_v19 }
  0x19   :  { %259 = vmatpush3.bf16.msra.mxu0 %v256_v19  ;;  %281 = vmatpush3.bf16.msra.mxu1 %v256_v19 }
  0x1a   :  { %261 = vmatprep.subr.bf16.mxu0 %v260_v22  ;;  %274 = vmatprep.subr.bf16.mxu1 %v260_v22 }
  0x1d   :  { %263 = vmatpush3.bf16.msra.mxu0 %v260_v22  ;;  %282 = vmatpush3.bf16.msra.mxu1 %v260_v22 }
  0x1e   :  { %265 = vmatprep.subr.bf16.mxu0 %v264_v25  ;;  %275 = vmatprep.subr.bf16.mxu1 %v264_v25 }
  0x21   :  { %267 = vmatpush3.bf16.msra.mxu0 %v264_v25  ;;  %283 = vmatpush3.bf16.msra.mxu1 %v264_v25 }
  0x24   :  { %231 = vmatmul.mubr.f32.vlgmr.msra.gmra.mrb[0].mxu0 %v27_v26  ;;  %234 = vmatmul.mubr.f32.vlgmr.msra.gmra.mrb[0].mxu1 %v29_v27 }
  0xf7   :  { %v232_v29 = vpop.f32.mrb[0].mxu0  ;;  %v235_v30 = vpop.f32.mrb[0].mxu1 }
  0xf8   :  { %v154_v31 = vadd.f32 %v232_v29, %v177_v28  ;;  %v156_v32 = vadd.f32 %v235_v30, %v177_v28  ;;  %v112_v33 = vpop.f32.mrb[1].mxu0  ;;  %v122_v34 = vpop.f32.mrb[1].mxu1 }
  0xf9   :  { %v153_v35 = vadd.f32 %v177_v28, %v112_v33  ;;  %v155_v36 = vadd.f32 %v177_v28, %v122_v34 }
  0xfa   :  { %vm158_vm0 = vcmp.ge.f32.partialorder %v154_v31, 0.0  ;;  %v162_v37 = vmul.f32 0.01, %v154_v31  ;;  %vm160_vm1 = vcmp.ge.f32.partialorder %v156_v32, 0.0  ;;  %v164_v38 = vmul.f32 0.01, %v156_v32 }
  0xfb   :  { %vm157_vm2 = vcmp.ge.f32.partialorder %v153_v35, 0.0  ;;  %v161_v39 = vmul.f32 0.01, %v153_v35  ;;  %vm159_vm3 = vcmp.ge.f32.partialorder %v155_v36, 0.0  ;;  %v163_v40 = vmul.f32 0.01, %v155_v36 }
  0xfc   :  { %v166_v41 = vsel %vm158_vm0, %v154_v31, %v162_v37  ;;  %v168_v42 = vsel %vm160_vm1, %v156_v32, %v164_v38 }
  0xfd   :  { %170 = vst [vmem:[%s382_s3 + $0x8] sm:$0xff] %v166_v41  ;;  %172 = vst [vmem:[%s382_s3 + $0x18] sm:$0xff] %v168_v42  ;;  %v165_v43 = vsel %vm157_vm2, %v153_v35, %v161_v39  ;;  %v167_v44 = vsel %vm159_vm3, %v155_v36, %v163_v40 }
  0xfe   :  { %169 = vst [vmem:[%s382_s3] sm:$0xff] %v165_v43  ;;  %171 = vst [vmem:[%s382_s3 + $0x10] sm:$0xff] %v167_v44 }

// kernel: discriminator_forward.7
= control target key start
LH: loop header
LB: loop body
LE: loop exit
PB: predicated region body
PF: predicated region fallthrough
CT: control target
= control target key end

     0   :  { %s342_s1 = inlined_call_operand.vmem [shape: f32[256,128], index: 1, kind: input, shape index: {}]   ;;  %s343_s0 = inlined_call_operand.vmem [shape: f32[8,256], index: 0, kind: input, shape index: {}]   ;;  %s344_s2 = inlined_call_operand.vmem [shape: f32[1,128], index: 2, kind: input, shape index: {}]   ;;  %s345_s3 = inlined_call_operand.vmem [shape: f32[8,128], index: 3, kind: output, shape index: {}]  }
   0x1   :  { %v38_v0 = vld [vmem:[%s342_s1 + $0x80] sm:$0xff]  ;;  %v39_v1 = vld [vmem:[%s342_s1 + $0x88] sm:$0xff]  ;;  %v40_v5 = vld [vmem:[%s342_s1 + $0x90] sm:$0xff] }
   0x2   :  { %v22_v2 = vld [vmem:[%s342_s1] sm:$0xff]  ;;  %v182_v3 = vpack.c.bf16 %v39_v1, %v38_v0  ;;  %v23_v4 = vld [vmem:[%s342_s1 + $0x8] sm:$0xff]  ;;  %v41_v6 = vld [vmem:[%s342_s1 + $0x98] sm:$0xff] }
   0x3   :  { %v184_v7 = vpack.c.bf16 %v23_v4, %v22_v2  ;;  %v186_v8 = vpack.c.bf16 %v41_v6, %v40_v5  ;;  %v24_v9 = vld [vmem:[%s342_s1 + $0x10] sm:$0xff]  ;;  %v25_v10 = vld [vmem:[%s342_s1 + $0x18] sm:$0xff]  ;;  %v42_v11 = vld [vmem:[%s342_s1 + $0xa0] sm:$0xff] }
   0x4   :  { %183 = vmatprep.subr.bf16.mxu0 %v182_v3  ;;  %v43_v12 = vld [vmem:[%s342_s1 + $0xa8] sm:$0xff]  ;;  %v188_v13 = vpack.c.bf16 %v25_v10, %v24_v9  ;;  %v26_v15 = vld [vmem:[%s342_s1 + $0x20] sm:$0xff]  ;;  %v44_v17 = vld [vmem:[%s342_s1 + $0xb0] sm:$0xff] }
   0x5   :  { %185 = vmatpush3.bf16.msra.mxu0 %v184_v7  ;;  %v190_v14 = vpack.c.bf16 %v43_v12, %v42_v11  ;;  %v27_v16 = vld [vmem:[%s342_s1 + $0x28] sm:$0xff]  ;;  %v45_v18 = vld [vmem:[%s342_s1 + $0xb8] sm:$0xff]  ;;  %v28_v21 = vld [vmem:[%s342_s1 + $0x30] sm:$0xff] }
   0x6   :  { %187 = vmatprep.subr.bf16.mxu0 %v186_v8  ;;  %v192_v19 = vpack.c.bf16 %v27_v16, %v26_v15  ;;  %v194_v20 = vpack.c.bf16 %v45_v18, %v44_v17  ;;  %v29_v22 = vld [vmem:[%s342_s1 + $0x38] sm:$0xff]  ;;  %v46_v23 = vld [vmem:[%s342_s1 + $0xc0] sm:$0xff]  ;;  %v47_v24 = vld [vmem:[%s342_s1 + $0xc8] sm:$0xff] }
   0x7   :  { %v21_v25 = vld [vmem:[%s343_s0 + $0x8] sm:$0xff]  ;;  %v196_v26 = vpack.c.bf16 %v29_v22, %v28_v21  ;;  %v198_v27 = vpack.c.bf16 %v47_v24, %v46_v23  ;;  %v30_v28 = vld [vmem:[%s342_s1 + $0x40] sm:$0xff]  ;;  %v48_v30 = vld [vmem:[%s342_s1 + $0xd0] sm:$0xff] }
   0x8   :  { %118 = vmatprep.mubr.f32.mxu0 %v21_v25  ;;  %v31_v29 = vld [vmem:[%s342_s1 + $0x48] sm:$0xff]  ;;  %v49_v31 = vld [vmem:[%s342_s1 + $0xd8] sm:$0xff]  ;;  %v32_v34 = vld [vmem:[%s342_s1 + $0x50] sm:$0xff] }
   0x9   :  { %189 = vmatpush3.bf16.msra.mxu0 %v188_v13  ;;  %v200_v32 = vpack.c.bf16 %v31_v29, %v30_v28  ;;  %v202_v33 = vpack.c.bf16 %v49_v31, %v48_v30  ;;  %v33_v35 = vld [vmem:[%s342_s1 + $0x58] sm:$0xff]  ;;  %v50_v36 = vld [vmem:[%s342_s1 + $0xe0] sm:$0xff]  ;;  %v51_v37 = vld [vmem:[%s342_s1 + $0xe8] sm:$0xff] }
   0xa   :  { %191 = vmatprep.subr.bf16.mxu0 %v190_v14  ;;  %v204_v38 = vpack.c.bf16 %v33_v35, %v32_v34  ;;  %v206_v39 = vpack.c.bf16 %v51_v37, %v50_v36  ;;  %v34_v40 = vld [vmem:[%s342_s1 + $0x60] sm:$0xff]  ;;  %v35_v41 = vld [vmem:[%s342_s1 + $0x68] sm:$0xff]  ;;  %v52_v42 = vld [vmem:[%s342_s1 + $0xf0] sm:$0xff] }
   0xb   :  { %v53_v43 = vld [vmem:[%s342_s1 + $0xf8] sm:$0xff]  ;;  %v208_v44 = vpack.c.bf16 %v35_v41, %v34_v40  ;;  %v36_v46 = vld [vmem:[%s342_s1 + $0x70] sm:$0xff]  ;;  %v20_v49 = vld [vmem:[%s343_s0] sm:$0xff] }
   0xc   :  { %v210_v45 = vpack.c.bf16 %v53_v43, %v52_v42  ;;  %v37_v47 = vld [vmem:[%s342_s1 + $0x78] sm:$0xff]  ;;  %v146_v52 = vld [vmem:[%s344_s2] ss:$0 sm:$0xff] }
   0xd   :  { %193 = vmatpush3.bf16.msra.mxu0 %v192_v19  ;;  %v212_v48 = vpack.c.bf16 %v37_v47, %v36_v46 }
   0xe   :  { %195 = vmatprep.subr.bf16.mxu0 %v194_v20 }
  0x11   :  { %197 = vmatpush3.bf16.msra.mxu0 %v196_v26 }
  0x12   :  { %199 = vmatprep.subr.bf16.mxu0 %v198_v27 }
  0x15   :  { %201 = vmatpush3.bf16.msra.mxu0 %v200_v32 }
  0x16   :  { %203 = vmatprep.subr.bf16.mxu0 %v202_v33 }
  0x19   :  { %205 = vmatpush3.bf16.msra.mxu0 %v204_v38 }
  0x1a   :  { %207 = vmatprep.subr.bf16.mxu0 %v206_v39 }
  0x1d   :  { %209 = vmatpush3.bf16.msra.mxu0 %v208_v44 }
  0x1e   :  { %211 = vmatprep.subr.bf16.mxu0 %v210_v45 }
  0x21   :  { %213 = vmatpush3.bf16.msra.mxu0 %v212_v48 }
  0x24   :  { %119 = vmatmul.mubr.f32.vlgmr.msra.gmra.mrb[0].mxu0 %v20_v49 }
  0xf7   :  { %v179_v50 = vpop.f32.mrb[0].mxu0 }
  0xf8   :  { %v180_v51 = vpop.f32.mrb[1].mxu0 }
  0xf9   :  { %v181_v53 = vadd.f32 %v180_v51, %v179_v50 }
  0xfb   :  { %v137_v54 = vadd.f32 %v181_v53, %v146_v52 }
  0xfd   :  { %vm138_vm0 = vcmp.ge.f32.partialorder %v137_v54, 0.0  ;;  %v139_v55 = vmul.f32 0.01, %v137_v54 }
  0xff   :  { %v140_v56 = vsel %vm138_vm0, %v137_v54, %v139_v55 }
 0x100   :  { %141 = vst [vmem:[%s345_s3] sm:$0xff] %v140_v56 }

// kernel: discriminator_forward.9
= control target key start
LH: loop header
LB: loop body
LE: loop exit
PB: predicated region body
PF: predicated region fallthrough
CT: control target
= control target key end

     0   :  { %v206_v0 = vmov 0.0|0.0   ;;  %vm207_vm0 = vmmov 0   ;;  %v208_v4 = vmov 0.0   ;;  %s286_s1 = inlined_call_operand.vmem [shape: f32[128,128], index: 1, kind: input, shape index: {}]   ;;  %s287_s0 = inlined_call_operand.vmem [shape: f32[8,128], index: 0, kind: input, shape index: {}]   ;;  %s288_s2 = inlined_call_operand.vmem [shape: f32[1,128], index: 2, kind: input, shape index: {}]   ;;  %s289_s3 = inlined_call_operand.vmem [shape: f32[8,128], index: 3, kind: output, shape index: {}]  }
   0x1   :  { %179 = vmatprep.subr.bf16.mxu0 %v206_v0  ;;  %v21_v1 = vld [vmem:[%s286_s1] sm:$0xff]  ;;  %v22_v2 = vld [vmem:[%s286_s1 + $0x8] sm:$0xff]  ;;  %v23_v3 = vld [vmem:[%s286_s1 + $0x10] sm:$0xff]  ;;  %176 = vmatprep.mubr.msk.f32.mxu0 %vm207_vm0, %v208_v4 }
   0x2   :  { %v180_v5 = vpack.c.bf16 %v22_v2, %v21_v1  ;;  %v24_v6 = vld [vmem:[%s286_s1 + $0x18] sm:$0xff]  ;;  %v25_v8 = vld [vmem:[%s286_s1 + $0x20] sm:$0xff]  ;;  %v26_v9 = vld [vmem:[%s286_s1 + $0x28] sm:$0xff] }
   0x3   :  { %v183_v7 = vpack.c.bf16 %v24_v6, %v23_v3  ;;  %v186_v10 = vpack.c.bf16 %v26_v9, %v25_v8  ;;  %v27_v11 = vld [vmem:[%s286_s1 + $0x30] sm:$0xff]  ;;  %v28_v12 = vld [vmem:[%s286_s1 + $0x38] sm:$0xff]  ;;  %v29_v14 = vld [vmem:[%s286_s1 + $0x40] sm:$0xff] }
   0x4   :  { %181 = vmatpush3.bf16.msra.mxu0 %v180_v5  ;;  %v189_v13 = vpack.c.bf16 %v28_v12, %v27_v11  ;;  %v30_v15 = vld [vmem:[%s286_s1 + $0x48] sm:$0xff]  ;;  %v31_v17 = vld [vmem:[%s286_s1 + $0x50] sm:$0xff]  ;;  %v32_v18 = vld [vmem:[%s286_s1 + $0x58] sm:$0xff] }
   0x5   :  { %182 = vmatprep.subr.bf16.mxu0 %v206_v0  ;;  %v192_v16 = vpack.c.bf16 %v30_v15, %v29_v14  ;;  %v195_v19 = vpack.c.bf16 %v32_v18, %v31_v17  ;;  %v33_v20 = vld [vmem:[%s286_s1 + $0x60] sm:$0xff]  ;;  %v34_v21 = vld [vmem:[%s286_s1 + $0x68] sm:$0xff]  ;;  %v35_v23 = vld [vmem:[%s286_s1 + $0x70] sm:$0xff] }
   0x6   :  { %v198_v22 = vpack.c.bf16 %v34_v21, %v33_v20  ;;  %v36_v24 = vld [vmem:[%s286_s1 + $0x78] sm:$0xff]  ;;  %v20_v26 = vld [vmem:[%s287_s0] sm:$0xff] }
   0x7   :  { %v201_v25 = vpack.c.bf16 %v36_v24, %v35_v23  ;;  %v126_v27 = vld [vmem:[%s288_s2] ss:$0 sm:$0xff] }
   0x8   :  { %184 = vmatpush3.bf16.msra.mxu0 %v183_v7 }
   0x9   :  { %185 = vmatprep.subr.bf16.mxu0 %v206_v0 }
   0xc   :  { %187 = vmatpush3.bf16.msra.mxu0 %v186_v10 }
   0xd   :  { %188 = vmatprep.subr.bf16.mxu0 %v206_v0 }
  0x10   :  { %190 = vmatpush3.bf16.msra.mxu0 %v189_v13 }
  0x11   :  { %191 = vmatprep.subr.bf16.mxu0 %v206_v0 }
  0x14   :  { %193 = vmatpush3.bf16.msra.mxu0 %v192_v16 }
  0x15   :  { %194 = vmatprep.subr.bf16.mxu0 %v206_v0 }
  0x18   :  { %196 = vmatpush3.bf16.msra.mxu0 %v195_v19 }
  0x19   :  { %197 = vmatprep.subr.bf16.mxu0 %v206_v0 }
  0x1c   :  { %199 = vmatpush3.bf16.msra.mxu0 %v198_v22 }
  0x1d   :  { %200 = vmatprep.subr.bf16.mxu0 %v206_v0 }
  0x20   :  { %202 = vmatpush3.bf16.msra.mxu0 %v201_v25 }
  0x23   :  { %177 = vmatmul.mubr.f32.vlgmr.msra.gmra.mrb[0].mxu0 %v20_v26 }
  0xf6   :  { %v103_v28 = vpop.f32.mrb[0].mxu0 }
  0xf7   :  { %v120_v29 = vadd.f32 %v126_v27, %v103_v28  ;;  %v178_v30 = vpop.f32.mrb[1].mxu0 }
  0xf9   :  { %121 = vst [vmem:[%s289_s3] sm:$0xff] %v120_v29 }

// kernel: discriminator_forward.8
= control target key start
LH: loop header
LB: loop body
LE: loop exit
PB: predicated region body
PF: predicated region fallthrough
CT: control target
= control target key end

     0   :  { %v377_v3 = vmov 0.0|0.0   ;;  %vm378_vm0 = vmmov 0   ;;  %v379_v4 = vmov 0.0   ;;  %s567_s1 = inlined_call_operand.vmem [shape: f32[384,128], index: 1, kind: input, shape index: {}]   ;;  %s568_s0 = inlined_call_operand.vmem [shape: f32[8,384], index: 0, kind: input, shape index: {}]   ;;  %s569_s2 = inlined_call_operand.vmem [shape: f32[1,128], index: 2, kind: input, shape index: {}]   ;;  %s570_s3 = inlined_call_operand.vmem [shape: f32[8,128], index: 3, kind: output, shape index: {}]  }
   0x1   :  { %v39_v0 = vld [vmem:[%s567_s1 + $0x80] sm:$0xff]  ;;  %v40_v1 = vld [vmem:[%s567_s1 + $0x88] sm:$0xff]  ;;  %350 = vmatprep.subr.bf16.mxu1 %v377_v3  ;;  %315 = vmatprep.mubr.msk.f32.mxu1 %vm378_vm0, %v379_v4  ;;  %v41_v11 = vld [vmem:[%s567_s1 + $0x90] sm:$0xff] }
   0x2   :  { %v23_v2 = vld [vmem:[%s567_s1] sm:$0xff]  ;;  %v318_v5 = vpack.c.bf16 %v40_v1, %v39_v0  ;;  %v24_v6 = vld [vmem:[%s567_s1 + $0x8] sm:$0xff]  ;;  %v42_v12 = vld [vmem:[%s567_s1 + $0x98] sm:$0xff] }
   0x3   :  { %v55_v7 = vld [vmem:[%s567_s1 + $0x100] sm:$0xff]  ;;  %v56_v8 = vld [vmem:[%s567_s1 + $0x108] sm:$0xff]  ;;  %v320_v9 = vpack.c.bf16 %v24_v6, %v23_v2  ;;  %v25_v13 = vld [vmem:[%s567_s1 + $0x10] sm:$0xff]  ;;  %v322_v14 = vpack.c.bf16 %v42_v12, %v41_v11 }
   0x4   :  { %v351_v10 = vpack.c.bf16 %v56_v8, %v55_v7  ;;  %319 = vmatprep.subr.bf16.mxu0 %v318_v5  ;;  %v26_v15 = vld [vmem:[%s567_s1 + $0x18] sm:$0xff]  ;;  %v57_v16 = vld [vmem:[%s567_s1 + $0x110] sm:$0xff]  ;;  %v43_v20 = vld [vmem:[%s567_s1 + $0xa0] sm:$0xff] }
   0x5   :  { %v58_v17 = vld [vmem:[%s567_s1 + $0x118] sm:$0xff]  ;;  %321 = vmatpush3.bf16.msra.mxu0 %v320_v9  ;;  %v324_v18 = vpack.c.bf16 %v26_v15, %v25_v13  ;;  %v44_v21 = vld [vmem:[%s567_s1 + $0xa8] sm:$0xff]  ;;  %v27_v22 = vld [vmem:[%s567_s1 + $0x20] sm:$0xff] }
   0x6   :  { %352 = vmatpush3.bf16.msra.mxu1 %v351_v10  ;;  %v354_v19 = vpack.c.bf16 %v58_v17, %v57_v16  ;;  %323 = vmatprep.subr.bf16.mxu0 %v322_v14  ;;  %v326_v23 = vpack.c.bf16 %v44_v21, %v43_v20  ;;  %v28_v24 = vld [vmem:[%s567_s1 + $0x28] sm:$0xff]  ;;  %v59_v25 = vld [vmem:[%s567_s1 + $0x120] sm:$0xff]  ;;  %v45_v27 = vld [vmem:[%s567_s1 + $0xb0] sm:$0xff] }
   0x7   :  { %353 = vmatprep.subr.bf16.mxu1 %v377_v3  ;;  %v60_v26 = vld [vmem:[%s567_s1 + $0x128] sm:$0xff]  ;;  %v46_v28 = vld [vmem:[%s567_s1 + $0xb8] sm:$0xff]  ;;  %v328_v29 = vpack.c.bf16 %v28_v24, %v27_v22  ;;  %v29_v31 = vld [vmem:[%s567_s1 + $0x30] sm:$0xff] }
   0x8   :  { %v357_v30 = vpack.c.bf16 %v60_v26, %v59_v25  ;;  %v330_v32 = vpack.c.bf16 %v46_v28, %v45_v27  ;;  %v30_v33 = vld [vmem:[%s567_s1 + $0x38] sm:$0xff]  ;;  %v61_v34 = vld [vmem:[%s567_s1 + $0x130] sm:$0xff]  ;;  %v47_v36 = vld [vmem:[%s567_s1 + $0xc0] sm:$0xff] }
   0x9   :  { %325 = vmatpush3.bf16.msra.mxu0 %v324_v18  ;;  %v62_v35 = vld [vmem:[%s567_s1 + $0x138] sm:$0xff]  ;;  %v48_v37 = vld [vmem:[%s567_s1 + $0xc8] sm:$0xff]  ;;  %v332_v38 = vpack.c.bf16 %v30_v33, %v29_v31  ;;  %v31_v40 = vld [vmem:[%s567_s1 + $0x40] sm:$0xff] }
   0xa   :  { %355 = vmatpush3.bf16.msra.mxu1 %v354_v19  ;;  %327 = vmatprep.subr.bf16.mxu0 %v326_v23  ;;  %v360_v39 = vpack.c.bf16 %v62_v35, %v61_v34  ;;  %v334_v41 = vpack.c.bf16 %v48_v37, %v47_v36  ;;  %v32_v42 = vld [vmem:[%s567_s1 + $0x48] sm:$0xff]  ;;  %v63_v43 = vld [vmem:[%s567_s1 + $0x140] sm:$0xff]  ;;  %v49_v45 = vld [vmem:[%s567_s1 + $0xd0] sm:$0xff] }
   0xb   :  { %356 = vmatprep.subr.bf16.mxu1 %v377_v3  ;;  %v64_v44 = vld [vmem:[%s567_s1 + $0x148] sm:$0xff]  ;;  %v50_v46 = vld [vmem:[%s567_s1 + $0xd8] sm:$0xff]  ;;  %v336_v48 = vpack.c.bf16 %v32_v42, %v31_v40  ;;  %v33_v50 = vld [vmem:[%s567_s1 + $0x50] sm:$0xff] }
   0xc   :  { %v21_v47 = vld [vmem:[%s568_s0 + $0x8] sm:$0xff]  ;;  %v363_v49 = vpack.c.bf16 %v64_v44, %v63_v43  ;;  %v338_v51 = vpack.c.bf16 %v50_v46, %v49_v45  ;;  %v34_v52 = vld [vmem:[%s567_s1 + $0x58] sm:$0xff]  ;;  %v65_v53 = vld [vmem:[%s567_s1 + $0x150] sm:$0xff] }
   0xd   :  { %329 = vmatpush3.bf16.msra.mxu0 %v328_v29  ;;  %v66_v54 = vld [vmem:[%s567_s1 + $0x158] sm:$0xff]  ;;  %v51_v55 = vld [vmem:[%s567_s1 + $0xe0] sm:$0xff]  ;;  %v52_v56 = vld [vmem:[%s567_s1 + $0xe8] sm:$0xff]  ;;  %135 = vmatprep.mubr.f32.mxu0 %v21_v47  ;;  %v340_v57 = vpack.c.bf16 %v34_v52, %v33_v50 }
   0xe   :  { %358 = vmatpush3.bf16.msra.mxu1 %v357_v30  ;;  %331 = vmatprep.subr.bf16.mxu0 %v330_v32  ;;  %v366_v58 = vpack.c.bf16 %v66_v54, %v65_v53  ;;  %v35_v59 = vld [vmem:[%s567_s1 + $0x60] sm:$0xff]  ;;  %v342_v60 = vpack.c.bf16 %v52_v56, %v51_v55  ;;  %v36_v61 = vld [vmem:[%s567_s1 + $0x68] sm:$0xff]  ;;  %v53_v0 = vld [vmem:[%s567_s1 + $0xf0] sm:$0xff] }
   0xf   :  { %359 = vmatprep.subr.bf16.mxu1 %v377_v3  ;;  %v67_v62 = vld [vmem:[%s567_s1 + $0x160] sm:$0xff]  ;;  %v68_v63 = vld [vmem:[%s567_s1 + $0x168] sm:$0xff]  ;;  %v54_v1 = vld [vmem:[%s567_s1 + $0xf8] sm:$0xff]  ;;  %v344_v2 = vpack.c.bf16 %v36_v61, %v35_v59 }
  0x10   :  { %v369_v4 = vpack.c.bf16 %v68_v63, %v67_v62  ;;  %v37_v5 = vld [vmem:[%s567_s1 + $0x70] sm:$0xff]  ;;  %v346_v6 = vpack.c.bf16 %v54_v1, %v53_v0  ;;  %v38_v7 = vld [vmem:[%s567_s1 + $0x78] sm:$0xff]  ;;  %v20_v12 = vld [vmem:[%s568_s0] sm:$0xff] }
  0x11   :  { %333 = vmatpush3.bf16.msra.mxu0 %v332_v38  ;;  %v69_v8 = vld [vmem:[%s567_s1 + $0x170] sm:$0xff]  ;;  %v70_v9 = vld [vmem:[%s567_s1 + $0x178] sm:$0xff]  ;;  %v348_v10 = vpack.c.bf16 %v38_v7, %v37_v5 }
  0x12   :  { %361 = vmatpush3.bf16.msra.mxu1 %v360_v39  ;;  %335 = vmatprep.subr.bf16.mxu0 %v334_v41  ;;  %v372_v11 = vpack.c.bf16 %v70_v9, %v69_v8  ;;  %v22_v13 = vld [vmem:[%s568_s0 + $0x10] sm:$0xff] }
  0x13   :  { %362 = vmatprep.subr.bf16.mxu1 %v377_v3 }
  0x15   :  { %337 = vmatpush3.bf16.msra.mxu0 %v336_v48 }
  0x16   :  { %364 = vmatpush3.bf16.msra.mxu1 %v363_v49  ;;  %339 = vmatprep.subr.bf16.mxu0 %v338_v51 }
  0x17   :  { %365 = vmatprep.subr.bf16.mxu1 %v377_v3 }
  0x19   :  { %341 = vmatpush3.bf16.msra.mxu0 %v340_v57 }
  0x1a   :  { %367 = vmatpush3.bf16.msra.mxu1 %v366_v58  ;;  %343 = vmatprep.subr.bf16.mxu0 %v342_v60 }
  0x1b   :  { %368 = vmatprep.subr.bf16.mxu1 %v377_v3 }
  0x1d   :  { %345 = vmatpush3.bf16.msra.mxu0 %v344_v2 }
  0x1e   :  { %370 = vmatpush3.bf16.msra.mxu1 %v369_v4  ;;  %347 = vmatprep.subr.bf16.mxu0 %v346_v6 }
  0x1f   :  { %371 = vmatprep.subr.bf16.mxu1 %v377_v3  ;;  %v230_v3 = vld [vmem:[%s569_s2] ss:$0 sm:$0xff] }
  0x21   :  { %349 = vmatpush3.bf16.msra.mxu0 %v348_v10 }
  0x22   :  { %373 = vmatpush3.bf16.msra.mxu1 %v372_v11 }
  0x24   :  { %136 = vmatmul.mubr.f32.vlgmr.msra.gmra.mrb[0].mxu0 %v20_v12 }
  0x25   :  { %316 = vmatmul.mubr.f32.vlgmr.msra.gmra.mrb[0].mxu1 %v22_v13 }
  0xf7   :  { %v263_v14 = vpop.f32.mrb[0].mxu0 }
  0xf8   :  { %v207_v15 = vpop.f32.mrb[0].mxu1  ;;  %v264_v16 = vpop.f32.mrb[1].mxu0 }
  0xf9   :  { %v317_v17 = vpop.f32.mrb[1].mxu1  ;;  %v265_v18 = vadd.f32 %v264_v16, %v263_v14 }
  0xfb   :  { %v208_v19 = vadd.f32 %v265_v18, %v207_v15 }
  0xfd   :  { %v224_v20 = vadd.f32 %v230_v3, %v208_v19 }
  0xff   :  { %225 = vst [vmem:[%s570_s3] sm:$0xff] %v224_v20 }

</bundles_post_ra>
